<compile_context>
chip_gen: v5e
topology: v5e:2x2
jax: 0.10.0
libtpu: 0.0.40
codegen_flags: <defaults>
</compile_context>

<pallas_src>
import jax
import jax.numpy as jnp
from jax.experimental import pallas as pl
from jax.experimental.pallas import tpu as pltpu


def _relu_kernel(x_ref, o_ref):
    # One VPU vmax per vreg; broadcast-0 constant, no zeros tile materialized.
    o_ref[...] = jnp.maximum(x_ref[...], 0)


def _sublane_multiple(dtype):
    # Minimum second-minor tile per dtype: f32 -> 8, bf16/f16 -> 16, int8/fp8 -> 32.
    return {4: 8, 2: 16, 1: 32}.get(jnp.dtype(dtype).itemsize, 8)


_LANE_WIDTHS = (1024, 512, 256, 128)
_MIN_TILES = 4                       # grid steps needed for pipeline + v7x 2-TC split
_VMEM_LIMIT_BYTES = 32 * 1024 * 1024  # safe on v5e (128 MiB phys) and v7x (64 MiB phys)


def _default_tile_bytes():
    """~4 MiB tiles by default; ~2 MiB on v5e (lower HBM BW, small scoped VMEM)."""
    try:
        kind = jax.devices()[0].device_kind.lower()
    except Exception:
        return 2 << 20
    if "v5 lite" in kind or "v5lite" in kind or "v5e" in kind:
        return 2 << 20
    return 4 << 20


def _relu_2d(x2d, tile_rows, grid, in_place):
    rows, lanes = x2d.shape
    return pl.pallas_call(
        _relu_kernel,
        out_shape=jax.ShapeDtypeStruct((rows, lanes), x2d.dtype),
        grid_spec=pltpu.PrefetchScalarGridSpec(
            num_scalar_prefetch=0,
            grid=(grid,),
            in_specs=[pl.BlockSpec((tile_rows, lanes), lambda i: (i, 0))],
            out_specs=pl.BlockSpec((tile_rows, lanes), lambda i: (i, 0)),
        ),
        # Only alias when the caller explicitly opts in (i.e. donates the
        # buffer under jit); otherwise XLA would insert a defensive full copy.
        input_output_aliases=({0: 0} if in_place else {}),
        compiler_params=pltpu.CompilerParams(
            dimension_semantics=("parallel",),
            vmem_limit_bytes=_VMEM_LIMIT_BYTES,
        ),
    )(x2d)


def basic_block_id_forward(x, downsample=None, max_tile_bytes=None, in_place=False):
    """Pallas implementation of BasicBlockID.forward.

    x: jnp.ndarray of shape (N, C, H, W), any float dtype.
    downsample: optional JAX callable applied to x before the ReLU
                (mirrors the PyTorch `self.downsample`).
    max_tile_bytes: per-buffer VMEM tile target (default: ~4 MiB, 2 MiB on v5e).
    in_place: opt-in input/output aliasing; only beneficial when the caller
              donates the input buffer (e.g. jit(..., donate_argnums=...)).
    """
    identity = x if downsample is None else downsample(x)

    orig_shape = identity.shape
    dtype = identity.dtype
    total = identity.size
    itemsize = jnp.dtype(dtype).itemsize
    sublane = _sublane_multiple(dtype)

    if max_tile_bytes is None:
        max_tile_bytes = _default_tile_bytes()

    # Widest lane width whose (sublane x lanes) tile divides the element count
    # evenly -> pure reshape, lane-dense slab, no pad, no trailing slice.
    lanes = None
    for w in _LANE_WIDTHS:
        if total % (w * sublane) == 0:
            lanes = w
            break

    if lanes is None or total == 0:
        # Awkward sizes: a padded Pallas pass would cost ~3x the HBM traffic of
        # a fused XLA elementwise ReLU, so just let XLA do it at roofline.
        return jnp.maximum(identity, 0)

    rows = total // lanes                      # multiple of `sublane` by construction
    x2d = identity.reshape(rows, lanes)

    bytes_per_row = lanes * itemsize
    # Bandwidth-driven tile size (~2-4 MiB per buffer), sublane-rounded.
    tile_rows_bw = max(sublane, (max_tile_bytes // bytes_per_row) // sublane * sublane)
    # Keep at least _MIN_TILES grid steps so DMA-in / compute / DMA-out overlap
    # and v7x's two TensorCores both get a share of the stream.
    tile_rows_split = max(
        sublane, pl.cdiv(pl.cdiv(rows, _MIN_TILES), sublane) * sublane
    )
    tile_rows = min(tile_rows_bw, tile_rows_split, rows)
    grid = pl.cdiv(rows, tile_rows)

    out2d = _relu_2d(x2d, tile_rows, grid, in_place)
    return out2d.reshape(orig_shape)


if __name__ == "__main__":
    key = jax.random.PRNGKey(0)
    k1, k2, k3, k4 = jax.random.split(key, 4)

    # Standard small NCHW activation (lanes=256, single tile).
    x1 = jax.random.normal(k1, (2, 4, 16, 16), dtype=jnp.float32)
    # Multi-tile pipelined path (lanes=1024, grid of 4 tiles via _MIN_TILES).
    x2 = jax.random.normal(k2, (4, 8, 32, 32), dtype=jnp.float32)
    # Awkward size -> plain jnp.maximum fallback (no pad/slice passes).
    x3 = jax.random.normal(k3, (2, 3, 5, 7), dtype=jnp.float32)
    # bf16 input exercising the 16-row sublane tile.
    x4 = jax.random.normal(k4, (2, 16, 8, 8), dtype=jnp.float32).astype(jnp.bfloat16)

    o1 = jax.block_until_ready(basic_block_id_forward(x1))
    o2 = jax.block_until_ready(basic_block_id_forward(x2))
    o3 = jax.block_until_ready(basic_block_id_forward(x3))
    o4 = jax.block_until_ready(basic_block_id_forward(x4))

    for xin, out in ((x1, o1), (x2, o2), (x3, o3), (x4, o4)):
        ref = jnp.maximum(xin, 0)
        assert out.shape == xin.shape and out.dtype == xin.dtype
        assert jnp.array_equal(out, ref), "mismatch vs reference relu"

    # Opt-in in-place path: only worthwhile when the buffer is actually donated.
    ref2 = jnp.maximum(x2, 0)
    fwd_inplace = jax.jit(
        lambda t: basic_block_id_forward(t, in_place=True), donate_argnums=(0,)
    )
    o2_ip = jax.block_until_ready(fwd_inplace(x2))
    assert jnp.array_equal(o2_ip, ref2), "mismatch vs reference relu (in-place)"

    print("KERNEL_OK")
</pallas_src>

<mosaic_0001>
module attributes {stable_mosaic.version = 11 : i64} {
  func.func @_relu_kernel(%arg0: i32, %arg1: memref<8x256xf32, #tpu.memory_space<vmem>>, %arg2: memref<8x256xf32, #tpu.memory_space<vmem>>) attributes {dimension_semantics = [#tpu.dimension_semantics<parallel>], iteration_bounds = array<i64: 1>, scalar_prefetch = 0 : i64, scratch_operands = 0 : i64, tpu.core_type = #tpu.core_type<tc>, window_params = [{transform_indices = @transform_0, window_bounds = array<i64: 8, 256>}, {transform_indices = @transform_1, window_bounds = array<i64: 8, 256>}]} {
    %c0 = arith.constant 0 : index
    %c0_0 = arith.constant 0 : index
    %0 = vector.load %arg1[%c0, %c0_0] : memref<8x256xf32, #tpu.memory_space<vmem>>, vector<8x256xf32>
    %cst = arith.constant 0.000000e+00 : f32
    %1 = vector.broadcast %cst : f32 to vector<8x256xf32>
    %2 = arith.maximumf %0, %1 : vector<8x256xf32>
    %c0_1 = arith.constant 0 : index
    %c0_2 = arith.constant 0 : index
    %3 = vector.load %arg2[%c0_1, %c0_2] : memref<8x256xf32, #tpu.memory_space<vmem>>, vector<8x256xf32>
    tpu.vector_store %arg2[%c0_1, %c0_2], %2 {strides = array<i32>} : memref<8x256xf32, #tpu.memory_space<vmem>>, vector<8x256xf32>,
    return
  }
  func.func @transform_0(%arg0: i32) -> (i32, i32) {
    %c0_i32 = arith.constant 0 : i32
    %c0_i32_0 = arith.constant 0 : i32
    return %arg0, %c0_i32 : i32, i32
  }
  func.func @transform_1(%arg0: i32) -> (i32, i32) {
    %c0_i32 = arith.constant 0 : i32
    %c0_i32_0 = arith.constant 0 : i32
    return %arg0, %c0_i32 : i32, i32
  }
}

</mosaic_0001>

<bundles_post_ra>
// kernel: tpu_custom_call.1
= control target key start
LH: loop header
LB: loop body
LE: loop exit
PB: predicated region body
PF: predicated region fallthrough
CT: control target
= control target key end

     0   :  { %6 = vsyncpa [#allocation3], 0  ;;  %s118_s0 = inlined_call_operand.hbm [shape: f32[8,256], index: 0, kind: input, shape index: {}]   ;;  %s119_s1 = inlined_call_operand.hbm [shape: f32[8,256], index: 1, kind: output, shape index: {}]  }
   0x1   :  { %7 = vsyncpa [#allocation4], 0  ;;  %s13_s8 = sshll.u32 %s118_s0, 4  ;;  %s100_s9 = smov [#allocation2]   ;;  %s14_s8 = int_to_ptr.hbm [resolvable:$true] %s13_s8 }
   0x2   :  { %s15_s10 = sshll.u32 %s100_s9, 4  ;;  %s16_s10 = int_to_ptr.vmem [resolvable:$true] %s15_s10 }
   0x3   :  { %18 = dma.hbm_to_vmem [thread:$0]  %s14_s8, 256, %s16_s10, [#allocation3]  }
   0x4   :  { %96 = dma.done.wait [#allocation3], 256  }
   0x5   :  { %97 = vsyncadd [#allocation3], 4294967040  ;;  %s101_s11 = smov [#allocation5]   ;;  %s36_s15 = sshll.u32 %s119_s1, 4  ;;  %v23_v0 = vld [vmem:[#allocation2] sm:$0xff]  ;;  %v24_v1 = vld [vmem:[#allocation2 + $0x8] sm:$0xff]  ;;  %s37_s15 = int_to_ptr.hbm [resolvable:$true] %s36_s15 }
   0x6   :  { %s34_s12 = sshll.u32 %s101_s11, 4  ;;  %v25_v2 = vmax.f32 %v23_v0, 0.0  ;;  %v26_v3 = vmax.f32 %v24_v1, 0.0  ;;  %s35_s12 = int_to_ptr.vmem [resolvable:$true] %s34_s12 }
   0x8   :  { %27 = vst [vmem:[#allocation5] sm:$0xff] %v25_v2 }
   0x9   :  { %28 = vst [vmem:[#allocation5 + $0x8] sm:$0xff] %v26_v3 }
   0xa   :  { %39 = dma.vmem_to_hbm [thread:$0]  %s35_s12, 256, %s37_s15, [#allocation4]  }
   0xb   :  { %98 = dma.done.wait [#allocation4], 256  }
   0xc   :  { %99 = vsyncadd [#allocation4], 4294967040 }
   0xd   :  { %44 = vsyncpa [#allocation3], 1 }
   0xe   :  { %45 = vsyncpa [#allocation4], 1 }

</bundles_post_ra>
